<compile_context>
chip_gen: v5e
topology: v5e:2x2
jax: 0.10.0
libtpu: 0.0.40
codegen_flags: <defaults>
</compile_context>

<pallas_src>
import functools

import jax
import jax.numpy as jnp
from jax.experimental import pallas as pl
from jax.experimental.pallas import tpu as pltpu


def _round_up(x, m):
    return (x + m - 1) // m * m


def _ae_kernel(x_ref,
               w1_ref, b1_ref,
               w2_ref, b2_ref,
               w3_ref, b3_ref,
               w4_ref, b4_ref,
               dec_ref, enc_ref):
    """Whole hot path (4 matmuls + biases + ReLUs) on MXU/VPU, f32 accumulation."""
    cdt = w1_ref.dtype  # MXU operand dtype (f32 or bf16); biases stay f32.
    x = x_ref[...].astype(cdt)

    # encoder: Linear(input, hidden) + ReLU
    h1 = jnp.dot(x, w1_ref[...], preferred_element_type=jnp.float32)
    h1 = jnp.maximum(h1 + b1_ref[...], 0.0)

    # encoder: Linear(hidden, encoding) + ReLU  -> out_encoder
    enc = jnp.dot(h1.astype(cdt), w2_ref[...], preferred_element_type=jnp.float32)
    enc = jnp.maximum(enc + b2_ref[...], 0.0)

    # decoder: Linear(encoding, hidden) + ReLU
    h3 = jnp.dot(enc.astype(cdt), w3_ref[...], preferred_element_type=jnp.float32)
    h3 = jnp.maximum(h3 + b3_ref[...], 0.0)

    # decoder: Linear(hidden, input)  (no activation) -> out_decoder
    dec = jnp.dot(h3.astype(cdt), w4_ref[...], preferred_element_type=jnp.float32)
    dec = dec + b4_ref[...]

    enc_ref[...] = enc.astype(enc_ref.dtype)
    dec_ref[...] = dec.astype(dec_ref.dtype)


def _vmem_budget_and_limit():
    """Generation-aware planning budget and scoped VMEM limit (bytes)."""
    try:
        cap = int(pltpu.get_tpu_info().vmem_capacity_bytes)
    except Exception:
        cap = 64 * 1024 * 1024  # conservative fallback (v7x per-core physical)
    budget = int(0.55 * cap)    # what _pick_block_m plans to use
    limit = int(0.70 * cap)     # handed to the compiler, with headroom
    return budget, limit


def _pick_block_m(requested, b_pad, d_in, d_hid, d_enc, *,
                  w_bytes_per, stream_bytes_per, sub, budget, min_steps=2):
    """Largest batch tile (multiple of `sub`) fitting the VMEM budget.

    Prefers a tile that divides the padded batch (so wrapper pad/slice are
    no-ops) and keeps at least `min_steps` grid steps so the parallel batch
    axis can shard across both v7x TensorCores.
    """
    # Resident weights (single copy, memory_space=VMEM) + f32 biases.
    w_bytes = (w_bytes_per * (2 * d_in * d_hid + 2 * d_hid * d_enc)
               + 4 * (2 * d_hid + d_enc + d_in))
    # Streamed tiles (double-buffered by the pipeline): x, decoded, encoded.
    stream_row = 2 * stream_bytes_per * (2 * d_in + d_enc)
    # In-kernel f32 intermediates (h1, enc, h3, dec) + cast temporaries (~1.5x).
    interm_row = (3 * 4 * (2 * d_hid + d_enc + d_in)) // 2
    per_row = stream_row + interm_row

    bm = max(sub, min(requested, b_pad) // sub * sub)
    while bm > sub and w_bytes + bm * per_row > budget:
        bm = max(sub, (bm // 2) // sub * sub)

    # Keep >= min_steps grid steps (v7x megacore); negligible cost elsewhere.
    if b_pad >= min_steps * sub:
        bm = min(bm, max(sub, (b_pad // min_steps) // sub * sub))

    # Prefer a tile that divides b_pad exactly (no extra batch pad / slice),
    # unless that would shrink the tile by more than 2x.
    best_div = sub
    d = sub
    while d <= bm:
        if b_pad % d == 0:
            best_div = d
        d += sub
    if 2 * best_div >= bm:
        bm = best_div
    return bm


@functools.partial(jax.jit, static_argnames=("block_m", "compute_dtype"))
def autoencoder_forward(x, params, *, block_m=512, compute_dtype=jnp.float32):
    """Fused autoencoder forward pass.

    x: (B, input_size) float32
    params: dict with w1..w4 of shape (in, out) and b1..b4 of shape (1, out)
    returns: (decoded (B, input_size), encoded (B, encoding_size)).
    With compute_dtype=bf16 the streams/outputs are bf16 (f32 accumulation).
    """
    w1, b1 = params["w1"], params["b1"]
    w2, b2 = params["w2"], params["b2"]
    w3, b3 = params["w3"], params["b3"]
    w4, b4 = params["w4"], params["b4"]

    B, input_size = x.shape
    hidden_size = w1.shape[1]
    encoding_size = w2.shape[1]

    cdt = jnp.dtype(compute_dtype)
    # bf16 path also streams x / decoded / encoded in bf16 (HBM traffic is
    # dominated by these streams once weights are resident).
    stream_dt = cdt if cdt == jnp.bfloat16 else jnp.dtype(x.dtype)
    sub = 16 if stream_dt.itemsize < 4 else 8  # bf16 sublane packing

    # Feature dims padded to lane width (128) for lane-dense matmuls/stores.
    in_p = _round_up(input_size, 128)
    hid_p = _round_up(hidden_size, 128)
    enc_p = _round_up(encoding_size, 128)

    def prep(a, rows, cols, dt):
        if a.shape != (rows, cols):
            a = jnp.pad(a, ((0, rows - a.shape[0]), (0, cols - a.shape[1])))
        return a if a.dtype == dt else a.astype(dt)

    w1p, b1p = prep(w1, in_p, hid_p, cdt), prep(b1, 1, hid_p, jnp.float32)
    w2p, b2p = prep(w2, hid_p, enc_p, cdt), prep(b2, 1, enc_p, jnp.float32)
    w3p, b3p = prep(w3, enc_p, hid_p, cdt), prep(b3, 1, hid_p, jnp.float32)
    w4p, b4p = prep(w4, hid_p, in_p, cdt), prep(b4, 1, in_p, jnp.float32)

    # Batch tiling: generation-aware VMEM budget, no divisibility requirement.
    budget, vmem_limit = _vmem_budget_and_limit()
    b_pad = _round_up(max(B, sub), sub)
    bm = _pick_block_m(_round_up(block_m, sub), b_pad, in_p, hid_p, enc_p,
                       w_bytes_per=cdt.itemsize,
                       stream_bytes_per=stream_dt.itemsize,
                       sub=sub, budget=budget)
    B_pad = _round_up(b_pad, bm)

    xp = x
    if (B_pad, in_p) != x.shape:
        xp = jnp.pad(x, ((0, B_pad - B), (0, in_p - input_size)))
    if xp.dtype != stream_dt:
        xp = xp.astype(stream_dt)

    grid = (B_pad // bm,)

    # Resident weights/biases: whole array in VMEM, single copy, no pipelining.
    resident = pl.BlockSpec(memory_space=pltpu.MemorySpace.VMEM)
    in_specs = [
        pl.BlockSpec((bm, in_p), lambda i: (i, 0)),     # streamed x tile
        resident, resident,   # w1, b1
        resident, resident,   # w2, b2
        resident, resident,   # w3, b3
        resident, resident,   # w4, b4
    ]
    out_specs = [
        pl.BlockSpec((bm, in_p), lambda i: (i, 0)),     # decoded
        pl.BlockSpec((bm, enc_p), lambda i: (i, 0)),    # encoded
    ]
    out_shape = (
        jax.ShapeDtypeStruct((B_pad, in_p), stream_dt),
        jax.ShapeDtypeStruct((B_pad, enc_p), stream_dt),
    )

    decoded_p, encoded_p = pl.pallas_call(
        _ae_kernel,
        grid_spec=pltpu.PrefetchScalarGridSpec(
            num_scalar_prefetch=0,
            grid=grid,
            in_specs=in_specs,
            out_specs=out_specs,
        ),
        out_shape=out_shape,
        compiler_params=pltpu.CompilerParams(
            dimension_semantics=("parallel",),
            vmem_limit_bytes=vmem_limit),
    )(xp, w1p, b1p, w2p, b2p, w3p, b3p, w4p, b4p)

    decoded, encoded = decoded_p, encoded_p
    if (B_pad, in_p) != (B, input_size):
        decoded = decoded_p[:B, :input_size]
    if (B_pad, enc_p) != (B, encoding_size):
        encoded = encoded_p[:B, :encoding_size]
    return decoded, encoded


def init_params(key, input_size, hidden_size, encoding_size, dtype=jnp.float32):
    """Deterministic init mimicking torch.nn.Linear default: U(-1/sqrt(fan_in), +)."""
    keys = jax.random.split(key, 8)

    def linear(kw, kb, fan_in, fan_out):
        bound = 1.0 / jnp.sqrt(jnp.asarray(fan_in, dtype))
        w = jax.random.uniform(kw, (fan_in, fan_out), dtype, -bound, bound)
        b = jax.random.uniform(kb, (1, fan_out), dtype, -bound, bound)
        return w, b

    w1, b1 = linear(keys[0], keys[1], input_size, hidden_size)
    w2, b2 = linear(keys[2], keys[3], hidden_size, encoding_size)
    w3, b3 = linear(keys[4], keys[5], encoding_size, hidden_size)
    w4, b4 = linear(keys[6], keys[7], hidden_size, input_size)
    return {"w1": w1, "b1": b1, "w2": w2, "b2": b2,
            "w3": w3, "b3": b3, "w4": w4, "b4": b4}


def reference_forward(x, p):
    relu = lambda v: jnp.maximum(v, 0.0)
    h1 = relu(x @ p["w1"] + p["b1"])
    enc = relu(h1 @ p["w2"] + p["b2"])
    h3 = relu(enc @ p["w3"] + p["b3"])
    dec = h3 @ p["w4"] + p["b4"]
    return dec, enc


if __name__ == "__main__":
    key = jax.random.PRNGKey(0)

    # Test 1: module-default hidden/encoding sizes, lane-aligned input, f32.
    batch, input_size, hidden_size, encoding_size = 64, 128, 256, 128
    k1, k2, key = jax.random.split(key, 3)
    x = jax.random.normal(k1, (batch, input_size), jnp.float32)
    params = init_params(k2, input_size, hidden_size, encoding_size)

    decoded, encoded = autoencoder_forward(x, params)
    jax.block_until_ready((decoded, encoded))
    dec_ref, enc_ref = reference_forward(x, params)
    assert decoded.shape == (batch, input_size)
    assert encoded.shape == (batch, encoding_size)
    assert jnp.allclose(decoded, dec_ref, atol=1e-4, rtol=1e-4)
    assert jnp.allclose(encoded, enc_ref, atol=1e-4, rtol=1e-4)

    # Test 2: ragged batch + non-128-aligned feature dims (exercises padding).
    batch2, in2, hid2, enc2 = 50, 96, 64, 32
    k3, k4, key = jax.random.split(key, 3)
    x2 = jax.random.normal(k3, (batch2, in2), jnp.float32)
    params2 = init_params(k4, in2, hid2, enc2)

    decoded2, encoded2 = autoencoder_forward(x2, params2)
    jax.block_until_ready((decoded2, encoded2))
    dec_ref2, enc_ref2 = reference_forward(x2, params2)
    assert decoded2.shape == (batch2, in2)
    assert encoded2.shape == (batch2, enc2)
    assert jnp.allclose(decoded2, dec_ref2, atol=1e-4, rtol=1e-4)
    assert jnp.allclose(encoded2, enc_ref2, atol=1e-4, rtol=1e-4)

    # Test 3: bf16 streaming path (halves HBM traffic on v6e/v7x); loose tol.
    decoded3, encoded3 = autoencoder_forward(x, params,
                                             compute_dtype=jnp.bfloat16)
    jax.block_until_ready((decoded3, encoded3))
    assert decoded3.shape == (batch, input_size)
    assert encoded3.shape == (batch, encoding_size)
    assert jnp.allclose(decoded3.astype(jnp.float32), dec_ref,
                        atol=1e-1, rtol=1e-1)
    assert jnp.allclose(encoded3.astype(jnp.float32), enc_ref,
                        atol=1e-1, rtol=1e-1)

    print("KERNEL_OK")
</pallas_src>

<mosaic_0001>
module attributes {stable_mosaic.version = 11 : i64} {
  func.func @_ae_kernel(%arg0: i32, %arg1: memref<32x128xf32, #tpu.memory_space<vmem>>, %arg2: memref<128x256xf32, #tpu.memory_space<vmem>>, %arg3: memref<1x256xf32, #tpu.memory_space<vmem>>, %arg4: memref<256x128xf32, #tpu.memory_space<vmem>>, %arg5: memref<1x128xf32, #tpu.memory_space<vmem>>, %arg6: memref<128x256xf32, #tpu.memory_space<vmem>>, %arg7: memref<1x256xf32, #tpu.memory_space<vmem>>, %arg8: memref<256x128xf32, #tpu.memory_space<vmem>>, %arg9: memref<1x128xf32, #tpu.memory_space<vmem>>, %arg10: memref<32x128xf32, #tpu.memory_space<vmem>>, %arg11: memref<32x128xf32, #tpu.memory_space<vmem>>) attributes {dimension_semantics = [#tpu.dimension_semantics<parallel>], iteration_bounds = array<i64: 2>, scalar_prefetch = 0 : i64, scratch_operands = 0 : i64, tpu.core_type = #tpu.core_type<tc>, window_params = [{transform_indices = @transform_0, window_bounds = array<i64: 32, 128>}, {pipeline_mode = #tpu.pipeline_mode<synchronous>, transform_indices = @transform_1, window_bounds = array<i64: 128, 256>}, {pipeline_mode = #tpu.pipeline_mode<synchronous>, transform_indices = @transform_2, window_bounds = array<i64: 1, 256>}, {pipeline_mode = #tpu.pipeline_mode<synchronous>, transform_indices = @transform_3, window_bounds = array<i64: 256, 128>}, {pipeline_mode = #tpu.pipeline_mode<synchronous>, transform_indices = @transform_4, window_bounds = array<i64: 1, 128>}, {pipeline_mode = #tpu.pipeline_mode<synchronous>, transform_indices = @transform_5, window_bounds = array<i64: 128, 256>}, {pipeline_mode = #tpu.pipeline_mode<synchronous>, transform_indices = @transform_6, window_bounds = array<i64: 1, 256>}, {pipeline_mode = #tpu.pipeline_mode<synchronous>, transform_indices = @transform_7, window_bounds = array<i64: 256, 128>}, {pipeline_mode = #tpu.pipeline_mode<synchronous>, transform_indices = @transform_8, window_bounds = array<i64: 1, 128>}, {transform_indices = @transform_9, window_bounds = array<i64: 32, 128>}, {transform_indices = @transform_10, window_bounds = array<i64: 32, 128>}]} {
    %c0 = arith.constant 0 : index
    %c0_0 = arith.constant 0 : index
    %0 = vector.load %arg1[%c0, %c0_0] : memref<32x128xf32, #tpu.memory_space<vmem>>, vector<32x128xf32>
    %c0_1 = arith.constant 0 : index
    %c0_2 = arith.constant 0 : index
    %1 = vector.load %arg2[%c0_1, %c0_2] : memref<128x256xf32, #tpu.memory_space<vmem>>, vector<128x256xf32>
    %cst = arith.constant dense<0.000000e+00> : vector<32x256xf32>
    %2 = tpu.matmul %0, %1, %cst {dimension_numbers = #tpu.dot_dimension_numbers<[1], [0], [0], [1], [0, 0, 1, 1], [], []>} : vector<32x128xf32>, vector<128x256xf32>, vector<32x256xf32> -> vector<32x256xf32>
    %c0_3 = arith.constant 0 : index
    %c0_4 = arith.constant 0 : index
    %3 = vector.load %arg3[%c0_3, %c0_4] : memref<1x256xf32, #tpu.memory_space<vmem>>, vector<1x256xf32>
    %4 = vector.broadcast %3 : vector<1x256xf32> to vector<32x256xf32>
    %5 = arith.addf %2, %4 : vector<32x256xf32>
    %cst_5 = arith.constant 0.000000e+00 : f32
    %6 = vector.broadcast %cst_5 : f32 to vector<32x256xf32>
    %7 = arith.maximumf %5, %6 : vector<32x256xf32>
    %c0_6 = arith.constant 0 : index
    %c0_7 = arith.constant 0 : index
    %8 = vector.load %arg4[%c0_6, %c0_7] : memref<256x128xf32, #tpu.memory_space<vmem>>, vector<256x128xf32>
    %cst_8 = arith.constant dense<0.000000e+00> : vector<32x128xf32>
    %9 = tpu.matmul %7, %8, %cst_8 {dimension_numbers = #tpu.dot_dimension_numbers<[1], [0], [0], [1], [0, 0, 1, 1], [], []>} : vector<32x256xf32>, vector<256x128xf32>, vector<32x128xf32> -> vector<32x128xf32>
    %c0_9 = arith.constant 0 : index
    %c0_10 = arith.constant 0 : index
    %10 = vector.load %arg5[%c0_9, %c0_10] : memref<1x128xf32, #tpu.memory_space<vmem>>, vector<1x128xf32>
    %11 = vector.broadcast %10 : vector<1x128xf32> to vector<32x128xf32>
    %12 = arith.addf %9, %11 : vector<32x128xf32>
    %cst_11 = arith.constant 0.000000e+00 : f32
    %13 = vector.broadcast %cst_11 : f32 to vector<32x128xf32>
    %14 = arith.maximumf %12, %13 : vector<32x128xf32>
    %c0_12 = arith.constant 0 : index
    %c0_13 = arith.constant 0 : index
    %15 = vector.load %arg6[%c0_12, %c0_13] : memref<128x256xf32, #tpu.memory_space<vmem>>, vector<128x256xf32>
    %cst_14 = arith.constant dense<0.000000e+00> : vector<32x256xf32>
    %16 = tpu.matmul %14, %15, %cst_14 {dimension_numbers = #tpu.dot_dimension_numbers<[1], [0], [0], [1], [0, 0, 1, 1], [], []>} : vector<32x128xf32>, vector<128x256xf32>, vector<32x256xf32> -> vector<32x256xf32>
    %c0_15 = arith.constant 0 : index
    %c0_16 = arith.constant 0 : index
    %17 = vector.load %arg7[%c0_15, %c0_16] : memref<1x256xf32, #tpu.memory_space<vmem>>, vector<1x256xf32>
    %18 = vector.broadcast %17 : vector<1x256xf32> to vector<32x256xf32>
    %19 = arith.addf %16, %18 : vector<32x256xf32>
    %cst_17 = arith.constant 0.000000e+00 : f32
    %20 = vector.broadcast %cst_17 : f32 to vector<32x256xf32>
    %21 = arith.maximumf %19, %20 : vector<32x256xf32>
    %c0_18 = arith.constant 0 : index
    %c0_19 = arith.constant 0 : index
    %22 = vector.load %arg8[%c0_18, %c0_19] : memref<256x128xf32, #tpu.memory_space<vmem>>, vector<256x128xf32>
    %cst_20 = arith.constant dense<0.000000e+00> : vector<32x128xf32>
    %23 = tpu.matmul %21, %22, %cst_20 {dimension_numbers = #tpu.dot_dimension_numbers<[1], [0], [0], [1], [0, 0, 1, 1], [], []>} : vector<32x256xf32>, vector<256x128xf32>, vector<32x128xf32> -> vector<32x128xf32>
    %c0_21 = arith.constant 0 : index
    %c0_22 = arith.constant 0 : index
    %24 = vector.load %arg9[%c0_21, %c0_22] : memref<1x128xf32, #tpu.memory_space<vmem>>, vector<1x128xf32>
    %25 = vector.broadcast %24 : vector<1x128xf32> to vector<32x128xf32>
    %26 = arith.addf %23, %25 : vector<32x128xf32>
    %c0_23 = arith.constant 0 : index
    %c0_24 = arith.constant 0 : index
    %27 = vector.load %arg11[%c0_23, %c0_24] : memref<32x128xf32, #tpu.memory_space<vmem>>, vector<32x128xf32>
    tpu.vector_store %arg11[%c0_23, %c0_24], %14 {strides = array<i32>} : memref<32x128xf32, #tpu.memory_space<vmem>>, vector<32x128xf32>,
    %c0_25 = arith.constant 0 : index
    %c0_26 = arith.constant 0 : index
    %28 = vector.load %arg10[%c0_25, %c0_26] : memref<32x128xf32, #tpu.memory_space<vmem>>, vector<32x128xf32>
    tpu.vector_store %arg10[%c0_25, %c0_26], %26 {strides = array<i32>} : memref<32x128xf32, #tpu.memory_space<vmem>>, vector<32x128xf32>,
    return
  }
  func.func @transform_0(%arg0: i32) -> (i32, i32) {
    %c0_i32 = arith.constant 0 : i32
    %c0_i32_0 = arith.constant 0 : i32
    return %arg0, %c0_i32 : i32, i32
  }
  func.func @transform_1(%arg0: i32) -> (i32, i32) {
    %c0_i32 = arith.constant 0 : i32
    %c0_i32_0 = arith.constant 0 : i32
    %c0_i32_1 = arith.constant 0 : i32
    return %c0_i32, %c0_i32_0 : i32, i32
  }
  func.func @transform_2(%arg0: i32) -> (i32, i32) {
    %c0_i32 = arith.constant 0 : i32
    %c0_i32_0 = arith.constant 0 : i32
    %c0_i32_1 = arith.constant 0 : i32
    return %c0_i32, %c0_i32_0 : i32, i32
  }
  func.func @transform_3(%arg0: i32) -> (i32, i32) {
    %c0_i32 = arith.constant 0 : i32
    %c0_i32_0 = arith.constant 0 : i32
    %c0_i32_1 = arith.constant 0 : i32
    return %c0_i32, %c0_i32_0 : i32, i32
  }
  func.func @transform_4(%arg0: i32) -> (i32, i32) {
    %c0_i32 = arith.constant 0 : i32
    %c0_i32_0 = arith.constant 0 : i32
    %c0_i32_1 = arith.constant 0 : i32
    return %c0_i32, %c0_i32_0 : i32, i32
  }
  func.func @transform_5(%arg0: i32) -> (i32, i32) {
    %c0_i32 = arith.constant 0 : i32
    %c0_i32_0 = arith.constant 0 : i32
    %c0_i32_1 = arith.constant 0 : i32
    return %c0_i32, %c0_i32_0 : i32, i32
  }
  func.func @transform_6(%arg0: i32) -> (i32, i32) {
    %c0_i32 = arith.constant 0 : i32
    %c0_i32_0 = arith.constant 0 : i32
    %c0_i32_1 = arith.constant 0 : i32
    return %c0_i32, %c0_i32_0 : i32, i32
  }
  func.func @transform_7(%arg0: i32) -> (i32, i32) {
    %c0_i32 = arith.constant 0 : i32
    %c0_i32_0 = arith.constant 0 : i32
    %c0_i32_1 = arith.constant 0 : i32
    return %c0_i32, %c0_i32_0 : i32, i32
  }
  func.func @transform_8(%arg0: i32) -> (i32, i32) {
    %c0_i32 = arith.constant 0 : i32
    %c0_i32_0 = arith.constant 0 : i32
    %c0_i32_1 = arith.constant 0 : i32
    return %c0_i32, %c0_i32_0 : i32, i32
  }
  func.func @transform_9(%arg0: i32) -> (i32, i32) {
    %c0_i32 = arith.constant 0 : i32
    %c0_i32_0 = arith.constant 0 : i32
    return %arg0, %c0_i32 : i32, i32
  }
  func.func @transform_10(%arg0: i32) -> (i32, i32) {
    %c0_i32 = arith.constant 0 : i32
    %c0_i32_0 = arith.constant 0 : i32
    return %arg0, %c0_i32 : i32, i32
  }
}

</mosaic_0001>

<bundles_post_ra>
// kernel: autoencoder_forward.1
= control target key start
LH: loop header
LB: loop body
LE: loop exit
PB: predicated region body
PF: predicated region fallthrough
CT: control target
= control target key end

     0   :  { %s1900_s0 = inlined_call_operand.hbm [shape: f32[64,128], index: 0, kind: input, shape index: {}]   ;;  %s1901_s1 = inlined_call_operand.hbm [shape: f32[128,256], index: 1, kind: input, shape index: {}]   ;;  %s1902_s2 = inlined_call_operand.hbm [shape: f32[1,256], index: 2, kind: input, shape index: {}]   ;;  %s1903_s3 = inlined_call_operand.hbm [shape: f32[256,128], index: 3, kind: input, shape index: {}]   ;;  %s1904_s4 = inlined_call_operand.hbm [shape: f32[1,128], index: 4, kind: input, shape index: {}]   ;;  %s1905_s5 = inlined_call_operand.hbm [shape: f32[128,256], index: 5, kind: input, shape index: {}]   ;;  %s1906_s6 = inlined_call_operand.vmem [shape: f32[1,256], index: 6, kind: input, shape index: {}]   ;;  %s1907_s7 = inlined_call_operand.hbm [shape: f32[256,128], index: 7, kind: input, shape index: {}]   ;;  %s1908_s8 = inlined_call_operand.vmem [shape: f32[1,128], index: 8, kind: input, shape index: {}]   ;;  %s1909_s9 = inlined_call_operand.hbm [shape: f32[64,128], index: 9, kind: output, shape index: {0}]   ;;  %s1910_s10 = inlined_call_operand.hbm [shape: f32[64,128], index: 10, kind: output, shape index: {1}]  }
   0x1   :  { %1914 = sst [smem:[#allocation23_spill]] %s1901_s1 }
   0x2   :  { %1915 = sst [smem:[#allocation24_spill]] %s1902_s2 }
   0x3   :  { %1916 = sst [smem:[#allocation25_spill]] %s1903_s3 }
   0x4   :  { %1917 = sst [smem:[#allocation26_spill]] %s1904_s4 }
   0x5   :  { %1918 = sst [smem:[#allocation27_spill]] %s1905_s5 }
   0x6   :  { %1919 = sst [smem:[#allocation28_spill]] %s1907_s7 }
   0x7   :  { %16 = vsyncpa [#allocation3], 0 }
   0x8   :  { %18 = vsyncpa [#allocation3 + $0x1], 0 }
   0x9   :  { %19 = vsyncpa [#allocation6], 0 }
   0xa   :  { %20 = vsyncpa [#allocation9], 0 }
   0xb   :  { %21 = vsyncpa [#allocation12], 0 }
   0xc   :  { %22 = vsyncpa [#allocation4], 0 }
   0xd   :  { %24 = vsyncpa [#allocation4 + $0x1], 0 }
   0xe   :  { %25 = vsyncpa [#allocation16], 0 }
   0xf   :  { %27 = vsyncpa [#allocation16 + $0x1], 0  ;;  %s1644_s13 = smov 0   ;;  %s1646_s14 = smov 0  }
  0x10   :  { %s1648_s15 = smov 0   ;;  %s1650_s16 = smov 0  }
  0x11 LB: > { %s1920_s1 = sld [smem:[#allocation23_spill]]  ;;  %s1668_s20 = sadd.s32 4294967295, %s1575_s16   ;;  %s1575_s16 = sphi %s1650_s16, %s1939_s16   ;;  %s1571_s15 = sphi %s1648_s15, %s1938_s15   ;;  %s1567_s14 = sphi %s1646_s14, %s1937_s14   ;;  %s1563_s13 = sphi %s1644_s13, %s1936_s13  }
  0x12   : > { %p1103_p0 = scmp.ge.s32.totalorder %s1575_s16, 1  ;;  %p54_p1 = scmp.eq.s32.totalorder %s1668_s20, 0 }
  0x13   : > { %p284_p2 = scmp.lt.s32.totalorder %s1575_s16, 3  ;;  %s1577_s22 = smov [#allocation5]  }
  0x14   : > { %s297_s23 = sshll.u32 %s1577_s22, 4  ;;  %s1922_s3 = sld [smem:[#allocation25_spill]]  ;;  %s298_s23 = int_to_ptr.vmem [resolvable:$true] %s297_s23 }
  0x15   : > { %p1673_p3 = pnand %p1103_p0, %p284_p2  ;;  %s1578_s28 = smov [#allocation8]  }
  0x16   : > { %s323_s29 = sshll.u32 %s1578_s28, 4  ;;  %s1579_s30 = smov 256   ;;  %s324_s29 = int_to_ptr.vmem [resolvable:$true] %s323_s29 }
  0x17   : > { %s295_s19 = sshll.u32 %s1920_s1, 4  ;;  %p1165_p4 = pneg %p1673_p3  ;;  %s296_s19 = int_to_ptr.hbm [resolvable:$true] %s295_s19 }
  0x18   : > { %s1580_s11 = smov 16   ;;  %s1911_s12 = smov 128  }
  0x19   : > { %p1685_p6 = pnand %p1165_p4, %p54_p1  ;;  %s1913_s17 = smov 8  }
  0x1a   : > { %s321_s26 = sshll.u32 %s1922_s3, 4  ;;  %s1924_s5 = sld [smem:[#allocation27_spill]]  ;;  %s322_s26 = int_to_ptr.hbm [resolvable:$true] %s321_s26 }
  0x1b   : > { %1168 = dma.hbm_to_vmem [thread:$0]  (!%p1685_p6), %s296_s19, 4096, %s298_s23, [#allocation6], %s1579_s30, %s1579_s30, %s1580_s11  }
  0x1c   : > { %1174 = dma.hbm_to_vmem [thread:$0]  (!%p1685_p6), %s322_s26, 4096, %s324_s29, [#allocation9], %s1911_s12, %s1911_s12, %s1913_s17  }
  0x1d   : > { %s1583_s25 = smov [#allocation11]   ;;  %s1925_s2 = sld [smem:[#allocation24_spill]] }
  0x1e   : > { %s349_s28 = sshll.u32 %s1583_s25, 4  ;;  %s1584_s3 = smov [#allocation7]   ;;  %s350_s28 = int_to_ptr.vmem [resolvable:$true] %s349_s28 }
  0x1f   : > { %s312_s26 = sshll.u32 %s1584_s3, 4  ;;  %s1926_s4 = sld [smem:[#allocation26_spill]]  ;;  %s313_s26 = int_to_ptr.vmem [resolvable:$true] %s312_s26 }
  0x20   : > { %s347_s24 = sshll.u32 %s1924_s5, 4  ;;  %s1927_s7 = sld [smem:[#allocation28_spill]]  ;;  %s348_s24 = int_to_ptr.hbm [resolvable:$true] %s347_s24 }
  0x21   : > { %1180 = dma.hbm_to_vmem [thread:$0]  (!%p1685_p6), %s348_s24, 4096, %s350_s28, [#allocation12], %s1579_s30, %s1579_s30, %s1580_s11  }
  0x22   : > { %s1585_s11 = smov [#allocation10]   ;;  %s1586_s12 = smov [#allocation13]  }
  0x23   : > { %s310_s23 = sshll.u32 %s1925_s2, 4  ;;  %s338_s3 = sshll.u32 %s1585_s11, 4  ;;  %s311_s23 = int_to_ptr.hbm [resolvable:$true] %s310_s23  ;;  %s339_s3 = int_to_ptr.vmem [resolvable:$true] %s338_s3 }
  0x24   : > { %1171 = dma.hbm_to_vmem [thread:$0]  (!%p1685_p6), %s311_s23, 32, %s313_s26, [#allocation6]  }
  0x25   : > { %s336_s18 = sshll.u32 %s1926_s4, 4  ;;  %s366_s24 = sshll.u32 %s1586_s12, 4  ;;  %s337_s18 = int_to_ptr.hbm [resolvable:$true] %s336_s18  ;;  %s367_s24 = int_to_ptr.vmem [resolvable:$true] %s366_s24 }
  0x26   : > { %s364_s30 = sshll.u32 %s1927_s7, 4  ;;  %s1928_s25 = smov 128   ;;  %s365_s30 = int_to_ptr.hbm [resolvable:$true] %s364_s30 }
  0x27   : > { %1177 = dma.hbm_to_vmem [thread:$0]  (!%p1685_p6), %s337_s18, 16, %s339_s3, [#allocation9]  }
  0x28   : > { %1183 = dma.hbm_to_vmem [thread:$0]  (!%p1685_p6), %s365_s30, 4096, %s367_s24, [#allocation12], %s1928_s25, %s1928_s25, %s1913_s17  }
  0x29   : > { %s1102_s28 = sadd.s32 4294967294, %s1575_s16   ;;  %s1721_s19 = sadd.s32 1, %s1575_s16  }
  0x2a   : > { %s37_s23 = ssub.s32 %s1575_s16, %s1721_s19  ;;  %s40_s26 = sadd.s32 1, %s1571_s15 }
  0x2b   : > { %p38_p7 = scmp.eq.s32.totalorder %s37_s23, 0  ;;  %p47_p8 = scmp.ne.s32.totalorder %s1571_s15, %s1567_s14 }
  0x2c   : > { %p48_p9 = scmp.eq.s32.totalorder %s1575_s16, 0  ;;  %p53_p10 = scmp.ne.s32.totalorder %s1567_s14, %s1563_s13 }
  0x2d   : > { %s1732_s29 = scalar_select %p38_p7, %s1571_s15, %s40_s26  }
  0x2e   : > { %p1734_p11 = por %p48_p9, %p47_p8  ;;  %p1740_p12 = por %p54_p1, %p53_p10 }
  0x2f   : > { %p245_p13 = scmp.eq.s32.totalorder %s1668_s20, 1  ;;  %p251_p0 = scmp.eq.s32.totalorder %s1102_s28, 1 }
  0x30   : > { %p1201_p2 = scmp.lt.s32.totalorder %s1575_s16, 2  ;;  %s383_s1 = sand.u32 1, %s1571_s15  }
  0x31   : > { %p1747_p4 = por %p245_p13, %p47_p8  ;;  %p1751_p6 = por %p251_p0, %p53_p10 }
  0x32   : > { %s1111_s11 = sshll.u32 %s383_s1, 5  ;;  %s1132_s3 = sshll.u32 %s1575_s16, 5 }
  0x33   : > { %s392_s23 = scalar_lea.hbm %s1900_s0, %s1132_s3  ;;  %s387_s26 = scalar_lea.vmem [#allocation2], %s1111_s11 }
  0x34   : > { %s395_s17 = sshll.u32 %s387_s26, 4  ;;  %s393_s2 = sshll.u32 %s392_s23, 4  ;;  %s396_s17 = int_to_ptr.vmem [resolvable:$true] %s395_s17  ;;  %s394_s2 = int_to_ptr.hbm [resolvable:$true] %s393_s2 }
  0x35   : > { %p1761_p7 = pnand %p1201_p2, %p1734_p11  ;;  %s384_s4 = scalar_lea.sflag [#allocation3], %s383_s1 }
  0x36   : > { %s1435_s5 = sshra.s32 %s394_s2, 4  ;;  %s1442_s12 = scalar_lea.hbm %s1900_s0, 64  ;;  %s1436_s5 = int_to_ptr.hbm [resolvable:$true] %s1435_s5 }
  0x37   : > { %s1437_s7 = scalar_lea.hbm %s1436_s5, 32  ;;  %p1439_p9 = pneg %p1761_p7 }
  0x38   : > { %p1438_p8 = scmp.ne.s32.totalorder %s1436_s5, %s1437_s7  ;;  %p1443_p11 = scmp.lt.s32.totalorder %s1436_s5, %s1900_s0 }
  0x39   : > { %p1444_p0 = scmp.lt.s32.totalorder %s1442_s12, %s1437_s7 }
  0x3a   : > { %p1440_p10 = pnand %p1439_p9, %p1438_p8 }
  0x3b   : > { %p1445_p2 = por %p1444_p0, %p1443_p11 }
  0x3c   : > { %p1441_p13 = pneg %p1440_p10 }
  0x3e   : > { %p1446_p5 = pnand %p1445_p2, %p1441_p13 }
  0x40   : > { %1449 = shalt.err (!%p1446_p5)
}
  0x41   : > { %s1934_s1 = smov 8   ;;  %407 = sbr.rel (%p1673_p3) target bundleno = 670 (0x29e), region = 56 }
  0x42   : > { %1187 = dma.hbm_to_vmem [thread:$0]  (!%p1761_p7), %s394_s2, 512, %s396_s17, %s384_s4, %s1928_s25, %s1928_s25, %s1934_s1  }
  0x43   : > { %s1781_s23 = sand.u32 (!%p1673_p3), 1, %s1567_s14  }
  0x44   : > { %s1784_s5 = sshll.u32 (!%p1673_p3), %s1781_s23, 5  ;;  %s410_s7 = scalar_lea.sflag (!%p1673_p3), [#allocation3], %s1781_s23 }
  0x45   : > { %s1788_s26 = scalar_lea.vmem (!%p1673_p3), [#allocation2], %s1784_s5 }
  0x46   : > { %1538 = dma.done.wait (%p1740_p12), %s410_s7, 512  }
  0x47   : > { %1540 = vsyncadd (%p1740_p12), %s410_s7, 4294966784 }
  0x48   : > { %1542 = dma.done.wait (%p54_p1), [#allocation6], 4128  }
  0x49   : > { %1544 = vsyncadd (%p54_p1), [#allocation6], 4294963168 }
  0x4a   : > { %1546 = dma.done.wait (%p54_p1), [#allocation9], 4112  }
  0x4b   : > { %1548 = vsyncadd (%p54_p1), [#allocation9], 4294963184 }
  0x4c   : > { %1550 = dma.done.wait (%p54_p1), [#allocation12], 8192  }
  0x4d   : > { %1552 = vsyncadd (%p54_p1), [#allocation12], 4294959104  ;;  %v523_v0 = vld [vmem:[#allocation5 + $0xf0] sm:$0xff]  ;;  %v521_v1 = vld [vmem:[#allocation5 + $0xe0] sm:$0xff]  ;;  %s1826_s2 = scalar_lea.vmem [#allocation15], %s1784_s5  ;;  %s1133_s25 = sshll.u32 %s1668_s20, 5 }
  0x4e   : > { %v524_v2 = vld [vmem:[#allocation5 + $0xf8] sm:$0xff]  ;;  %531 = vmatpush.msra.mxu0 %v523_v0  ;;  %v522_v3 = vld [vmem:[#allocation5 + $0xe8] sm:$0xff]  ;;  %v519_v4 = vld [vmem:[#allocation5 + $0xd0] sm:$0xff]  ;;  %s936_s17 = sshll.u32 %s1826_s2, 4  ;;  %s935_s11 = scalar_lea.hbm %s1910_s10, %s1133_s25  ;;  %s937_s17 = int_to_ptr.vmem [resolvable:$true] %s936_s17 }
  0x4f   : > { %560 = vmatpush.msra.mxu1 %v524_v2  ;;  %v520_v5 = vld [vmem:[#allocation5 + $0xd8] sm:$0xff]  ;;  %v517_v6 = vld [vmem:[#allocation5 + $0xc0] sm:$0xff]  ;;  %v518_v7 = vld [vmem:[#allocation5 + $0xc8] sm:$0xff]  ;;  %s938_s3 = sshll.u32 %s935_s11, 4  ;;  %s907_s12 = scalar_lea.sflag [#allocation16], %s1781_s23  ;;  %s939_s3 = int_to_ptr.hbm [resolvable:$true] %s938_s3 }
  0x50   : > { %532 = vmatpush.msra.mxu0 %v521_v1  ;;  %v515_v8 = vld [vmem:[#allocation5 + $0xb0] sm:$0xff]  ;;  %v516_v9 = vld [vmem:[#allocation5 + $0xb8] sm:$0xff]  ;;  %v513_v10 = vld [vmem:[#allocation5 + $0xa0] sm:$0xff]  ;;  %s1479_s24 = sshra.s32 %s939_s3, 4  ;;  %s1480_s24 = int_to_ptr.hbm [resolvable:$true] %s1479_s24 }
  0x51   : > { %561 = vmatpush.msra.mxu1 %v522_v3  ;;  %v514_v11 = vld [vmem:[#allocation5 + $0xa8] sm:$0xff]  ;;  %v511_v12 = vld [vmem:[#allocation5 + $0x90] sm:$0xff]  ;;  %v512_v13 = vld [vmem:[#allocation5 + $0x98] sm:$0xff]  ;;  %s1481_s27 = scalar_lea.hbm %s1480_s24, 32  ;;  %p1486_p12 = scmp.lt.s32.totalorder %s1480_s24, %s1910_s10 }
  0x52   : > { %533 = vmatpush.msra.mxu0 %v519_v4  ;;  %v509_v14 = vld [vmem:[#allocation5 + $0x80] sm:$0xff]  ;;  %v510_v15 = vld [vmem:[#allocation5 + $0x88] sm:$0xff]  ;;  %v507_v16 = vld [vmem:[#allocation5 + $0x70] sm:$0xff]  ;;  %p1482_p1 = scmp.ne.s32.totalorder %s1480_s24, %s1481_s27 }
  0x53   : > { %562 = vmatpush.msra.mxu1 %v520_v5  ;;  %v508_v17 = vld [vmem:[#allocation5 + $0x78] sm:$0xff]  ;;  %v505_v18 = vld [vmem:[#allocation5 + $0x60] sm:$0xff]  ;;  %v506_v19 = vld [vmem:[#allocation5 + $0x68] sm:$0xff] }
  0x54   : > { %534 = vmatpush.msra.mxu0 %v517_v6  ;;  %v503_v20 = vld [vmem:[#allocation5 + $0x50] sm:$0xff]  ;;  %v504_v21 = vld [vmem:[#allocation5 + $0x58] sm:$0xff]  ;;  %v501_v22 = vld [vmem:[#allocation5 + $0x40] sm:$0xff]  ;;  %p1483_p3 = pnand %p1482_p1, %p1747_p4 }
  0x55   : > { %563 = vmatpush.msra.mxu1 %v518_v7  ;;  %v502_v23 = vld [vmem:[#allocation5 + $0x48] sm:$0xff]  ;;  %v499_v24 = vld [vmem:[#allocation5 + $0x30] sm:$0xff]  ;;  %v500_v25 = vld [vmem:[#allocation5 + $0x38] sm:$0xff] }
  0x56   : > { %535 = vmatpush.msra.mxu0 %v515_v8  ;;  %v497_v26 = vld [vmem:[#allocation5 + $0x20] sm:$0xff]  ;;  %v498_v27 = vld [vmem:[#allocation5 + $0x28] sm:$0xff]  ;;  %v611_v30 = vld [vmem:[#allocation8 + $0x70] sm:$0xff]  ;;  %p1484_p5 = pneg %p1483_p3 }
  0x57   : > { %564 = vmatpush.msra.mxu1 %v516_v9  ;;  %v612_v28 = vld [vmem:[#allocation8 + $0x78] sm:$0xff]  ;;  %v627_v31 = vld [vmem:[#allocation8 + $0xf0] sm:$0xff]  ;;  %v610_v34 = vld [vmem:[#allocation8 + $0x68] sm:$0xff] }
  0x58   : > { %536 = vmatpush.msra.mxu0 %v513_v10  ;;  %v628_v29 = vld [vmem:[#allocation8 + $0xf8] sm:$0xff]  ;;  %v495_v32 = vld [vmem:[#allocation5 + $0x10] sm:$0xff]  ;;  %633 = vmatpush.msra.mxu2 %v612_v28  ;;  %v494_v37 = vld [vmem:[#allocation5 + $0x8] sm:$0xff] }
  0x59   : > { %565 = vmatpush.msra.mxu1 %v514_v11  ;;  %v496_v33 = vld [vmem:[#allocation5 + $0x18] sm:$0xff]  ;;  %662 = vmatpush.msra.mxu3 %v628_v29  ;;  %v626_v35 = vld [vmem:[#allocation8 + $0xe8] sm:$0xff]  ;;  %v493_v36 = vld [vmem:[#allocation5] sm:$0xff] }
  0x5a   : > { %537 = vmatpush.msra.mxu0 %v511_v12  ;;  %634 = vmatpush.msra.mxu2 %v611_v30  ;;  %v489_v38 = vld [vmem:[%s1788_s26] sm:$0xff]  ;;  %v607_v43 = vld [vmem:[#allocation8 + $0x50] sm:$0xff]  ;;  %v606_v45 = vld [vmem:[#allocation8 + $0x48] sm:$0xff] }
  0x5b   : > { %566 = vmatpush.msra.mxu1 %v512_v13  ;;  %663 = vmatpush.msra.mxu3 %v627_v31  ;;  %v609_v39 = vld [vmem:[#allocation8 + $0x60] sm:$0xff]  ;;  %v608_v41 = vld [vmem:[#allocation8 + $0x58] sm:$0xff]  ;;  %v623_v44 = vld [vmem:[#allocation8 + $0xd0] sm:$0xff] }
  0x5c   : > { %538 = vmatpush.msra.mxu0 %v509_v14  ;;  %635 = vmatpush.msra.mxu2 %v610_v34  ;;  %v625_v40 = vld [vmem:[#allocation8 + $0xe0] sm:$0xff]  ;;  %v624_v42 = vld [vmem:[#allocation8 + $0xd8] sm:$0xff]  ;;  %v622_v46 = vld [vmem:[#allocation8 + $0xc8] sm:$0xff] }
  0x5d   : > { %567 = vmatpush.msra.mxu1 %v510_v15  ;;  %664 = vmatpush.msra.mxu3 %v626_v35  ;;  %v490_v47 = vld [vmem:[%s1788_s26 + $0x8] sm:$0xff]  ;;  %v604_v50 = vld [vmem:[#allocation8 + $0x38] sm:$0xff]  ;;  %v603_v52 = vld [vmem:[#allocation8 + $0x30] sm:$0xff] }
  0x5e   : > { %539 = vmatpush.msra.mxu0 %v507_v16  ;;  %636 = vmatpush.msra.mxu2 %v609_v39  ;;  %v605_v48 = vld [vmem:[#allocation8 + $0x40] sm:$0xff]  ;;  %v620_v51 = vld [vmem:[#allocation8 + $0xb8] sm:$0xff]  ;;  %v619_v53 = vld [vmem:[#allocation8 + $0xb0] sm:$0xff] }
  0x5f   : > { %568 = vmatpush.msra.mxu1 %v508_v17  ;;  %665 = vmatpush.msra.mxu3 %v625_v40  ;;  %v621_v49 = vld [vmem:[#allocation8 + $0xc0] sm:$0xff]  ;;  %v602_v54 = vld [vmem:[#allocation8 + $0x28] sm:$0xff]  ;;  %v600_v59 = vld [vmem:[#allocation8 + $0x18] sm:$0xff] }
  0x60   : > { %540 = vmatpush.msra.mxu0 %v505_v18  ;;  %637 = vmatpush.msra.mxu2 %v608_v41  ;;  %v618_v55 = vld [vmem:[#allocation8 + $0xa8] sm:$0xff]  ;;  %v601_v57 = vld [vmem:[#allocation8 + $0x20] sm:$0xff]  ;;  %v492_v60 = vld [vmem:[%s1788_s26 + $0x18] sm:$0xff] }
  0x61   : > { %569 = vmatpush.msra.mxu1 %v506_v19  ;;  %666 = vmatpush.msra.mxu3 %v624_v42  ;;  %v491_v56 = vld [vmem:[%s1788_s26 + $0x10] sm:$0xff]  ;;  %v617_v58 = vld [vmem:[#allocation8 + $0xa0] sm:$0xff]  ;;  %v616_v62 = vld [vmem:[#allocation8 + $0x98] sm:$0xff]  ;;  %s1485_s26 = scalar_lea.hbm %s1910_s10, 64 }
  0x62   : > { %541 = vmatpush.msra.mxu0 %v503_v20  ;;  %638 = vmatpush.msra.mxu2 %v607_v43  ;;  %v599_v61 = vld [vmem:[#allocation8 + $0x10] sm:$0xff]  ;;  %v598_v63 = vld [vmem:[#allocation8 + $0x8] sm:$0xff]  ;;  %v597_v1 = vld [vmem:[#allocation8] sm:$0xff]  ;;  %p1487_p7 = scmp.lt.s32.totalorder %s1485_s26, %s1481_s27 }
  0x63   : > { %570 = vmatpush.msra.mxu1 %v504_v21  ;;  %667 = vmatpush.msra.mxu3 %v623_v44  ;;  %v615_v0 = vld [vmem:[#allocation8 + $0x90] sm:$0xff]  ;;  %v614_v2 = vld [vmem:[#allocation8 + $0x88] sm:$0xff]  ;;  %v613_v3 = vld [vmem:[#allocation8 + $0x80] sm:$0xff] }
  0x64   : > { %542 = vmatpush.msra.mxu0 %v501_v22  ;;  %639 = vmatpush.msra.mxu2 %v606_v45  ;;  %v525_v4 = vld [vmem:[#allocation7] sm:$0x3]  ;;  %v725_v7 = vld [vmem:[#allocation11 + $0xf0] sm:$0xff]  ;;  %v723_v9 = vld [vmem:[#allocation11 + $0xe0] sm:$0xff]  ;;  %p1488_p8 = por %p1487_p7, %p1486_p12 }
  0x65   : > { %571 = vmatpush.msra.mxu1 %v502_v23  ;;  %668 = vmatpush.msra.mxu3 %v622_v46  ;;  %v1810_v5 = vperm.slane %v525_v4, 0  ;;  %v1812_v6 = vperm.slane %v525_v4, 1  ;;  %v726_v8 = vld [vmem:[#allocation11 + $0xf8] sm:$0xff]  ;;  %v724_v10 = vld [vmem:[#allocation11 + $0xe8] sm:$0xff]  ;;  %v721_v11 = vld [vmem:[#allocation11 + $0xd0] sm:$0xff] }
  0x66   : > { %543 = vmatpush.msra.mxu0 %v499_v24  ;;  %640 = vmatpush.msra.mxu2 %v605_v48  ;;  %v722_v12 = vld [vmem:[#allocation11 + $0xd8] sm:$0xff]  ;;  %v719_v17 = vld [vmem:[#allocation11 + $0xc0] sm:$0xff]  ;;  %v720_v18 = vld [vmem:[#allocation11 + $0xc8] sm:$0xff]  ;;  %p1489_p9 = pnand %p1488_p8, %p1484_p5 }
  0x67   : > { %572 = vmatpush.msra.mxu1 %v500_v25  ;;  %669 = vmatpush.msra.mxu3 %v621_v49  ;;  %v717_v21 = vld [vmem:[#allocation11 + $0xb0] sm:$0xff]  ;;  %v718_v22 = vld [vmem:[#allocation11 + $0xb8] sm:$0xff]  ;;  %v715_v23 = vld [vmem:[#allocation11 + $0xa0] sm:$0xff] }
  0x68   : > { %544 = vmatpush.msra.mxu0 %v497_v26  ;;  %641 = vmatpush.msra.mxu2 %v604_v50  ;;  %v716_v24 = vld [vmem:[#allocation11 + $0xa8] sm:$0xff]  ;;  %v713_v25 = vld [vmem:[#allocation11 + $0x90] sm:$0xff]  ;;  %v714_v26 = vld [vmem:[#allocation11 + $0x98] sm:$0xff] }
  0x69   : > { %573 = vmatpush.msra.mxu1 %v498_v27  ;;  %670 = vmatpush.msra.mxu3 %v620_v51  ;;  %v711_v31 = vld [vmem:[#allocation11 + $0x80] sm:$0xff]  ;;  %v709_v35 = vld [vmem:[#allocation11 + $0x70] sm:$0xff]  ;;  %v706_v40 = vld [vmem:[#allocation11 + $0x58] sm:$0xff] }
  0x6a   : > { %545 = vmatpush.msra.mxu0 %v495_v32  ;;  %642 = vmatpush.msra.mxu2 %v603_v52  ;;  %v712_v32 = vld [vmem:[#allocation11 + $0x88] sm:$0xff]  ;;  %v705_v39 = vld [vmem:[#allocation11 + $0x50] sm:$0xff]  ;;  %v703_v45 = vld [vmem:[#allocation11 + $0x40] sm:$0xff] }
  0x6b   : > { %574 = vmatpush.msra.mxu1 %v496_v33  ;;  %671 = vmatpush.msra.mxu3 %v619_v53  ;;  %v704_v46 = vld [vmem:[#allocation11 + $0x48] sm:$0xff]  ;;  %v701_v49 = vld [vmem:[#allocation11 + $0x30] sm:$0xff] }
  0x6c   : > { %546 = vmatpush.msra.mxu0 %v493_v36  ;;  %643 = vmatpush.msra.mxu2 %v602_v54  ;;  %v710_v36 = vld [vmem:[#allocation11 + $0x78] sm:$0xff] }
  0x6d   : > { %575 = vmatpush.msra.mxu1 %v494_v37  ;;  %547 = vmatmul.f32.vlgmr.msra.gmra.mxu0 %v489_v38  ;;  %v707_v37 = vld [vmem:[#allocation11 + $0x60] sm:$0xff] }
  0x6e   : > { %576 = vmatmul.f32.vlgmr.msra.gmra.mxu1 %v489_v38  ;;  %672 = vmatpush.msra.mxu3 %v618_v55  ;;  %v708_v38 = vld [vmem:[#allocation11 + $0x68] sm:$0xff] }
  0x6f   : > { %644 = vmatpush.msra.mxu2 %v601_v57  ;;  %733 = vmatpush.msrb.mxu0 %v725_v7  ;;  %v699_v57 = vld [vmem:[#allocation11 + $0x20] sm:$0xff]  ;;  %v812_v7 = vld [vmem:[#allocation13 + $0x68] sm:$0xff] }
  0x70   : > { %673 = vmatpush.msra.mxu3 %v617_v58  ;;  %762 = vmatpush.msrb.mxu1 %v726_v8  ;;  %v700_v58 = vld [vmem:[#allocation11 + $0x28] sm:$0xff] }
  0x71   : > { %645 = vmatpush.msra.mxu2 %v600_v59  ;;  %734 = vmatpush.msrb.mxu0 %v723_v9  ;;  %v697_v59 = vld [vmem:[#allocation11 + $0x10] sm:$0xff]  ;;  %v828_v8 = vld [vmem:[#allocation13 + $0xe8] sm:$0xff] }
  0x72   : > { %674 = vmatpush.msra.mxu3 %v616_v62  ;;  %763 = vmatpush.msrb.mxu1 %v724_v10  ;;  %v696_v62 = vld [vmem:[#allocation11 + $0x8] sm:$0xff]  ;;  %v811_v10 = vld [vmem:[#allocation13 + $0x60] sm:$0xff] }
  0x73   : > { %646 = vmatpush.msra.mxu2 %v599_v61  ;;  %735 = vmatpush.msrb.mxu0 %v721_v11  ;;  %v695_v61 = vld [vmem:[#allocation11] sm:$0xff] }
  0x74   : > { %675 = vmatpush.msra.mxu3 %v615_v0  ;;  %764 = vmatpush.msrb.mxu1 %v722_v12  ;;  %v814_v0 = vld [vmem:[#allocation13 + $0x78] sm:$0xff]  ;;  %v827_v11 = vld [vmem:[#allocation13 + $0xe0] sm:$0xff] }
  0x75   : > { %550 = vmatmul.f32.gmra.mxu0 %v490_v47  ;;  %647 = vmatpush.msra.mxu2 %v598_v63  ;;  %v1822_v63 = vld [vmem:[#allocation10] ss:$0 sm:$0xff] }
  0x76   : > { %579 = vmatmul.f32.gmra.mxu1 %v490_v47  ;;  %676 = vmatpush.msra.mxu3 %v614_v2  ;;  %v813_v2 = vld [vmem:[#allocation13 + $0x70] sm:$0xff] }
  0x77   : > { %648 = vmatpush.msra.mxu2 %v597_v1  ;;  %736 = vmatpush.msrb.mxu0 %v719_v17  ;;  %v830_v1 = vld [vmem:[#allocation13 + $0xf8] sm:$0xff] }
  0x78   : > { %677 = vmatpush.msra.mxu3 %v613_v3  ;;  %765 = vmatpush.msrb.mxu1 %v720_v18 }
  0x79   : > { %737 = vmatpush.msrb.mxu0 %v717_v21  ;;  %835 = vmatpush.msrb.mxu2 %v814_v0  ;;  %v824_v21 = vld [vmem:[#allocation13 + $0xc8] sm:$0xff] }
  0x7a   : > { %766 = vmatpush.msrb.mxu1 %v718_v22  ;;  %864 = vmatpush.msrb.mxu3 %v830_v1 }
  0x7b   : > { %738 = vmatpush.msrb.mxu0 %v715_v23  ;;  %836 = vmatpush.msrb.mxu2 %v813_v2  ;;  %v807_v23 = vld [vmem:[#allocation13 + $0x40] sm:$0xff] }
  0x7c   : > { %767 = vmatpush.msrb.mxu1 %v716_v24  ;;  %v823_v24 = vld [vmem:[#allocation13 + $0xc0] sm:$0xff] }
  0x7d   : > { %553 = vmatmul.f32.gmra.mxu0 %v491_v56  ;;  %837 = vmatpush.msrb.mxu2 %v812_v7 }
  0x7e   : > { %582 = vmatmul.f32.gmra.mxu1 %v491_v56  ;;  %739 = vmatpush.msrb.mxu0 %v713_v25  ;;  %v702_v56 = vld [vmem:[#allocation11 + $0x38] sm:$0xff] }
  0x7f   : > { %768 = vmatpush.msrb.mxu1 %v714_v26  ;;  %838 = vmatpush.msrb.mxu2 %v811_v10  ;;  %v806_v26 = vld [vmem:[#allocation13 + $0x38] sm:$0xff] }
  0x80   : > { %740 = vmatpush.msrb.mxu0 %v711_v31 }
  0x81   : > { %769 = vmatpush.msrb.mxu1 %v712_v32 }
  0x82   : > { %741 = vmatpush.msrb.mxu0 %v709_v35 }
  0x83   : > { %770 = vmatpush.msrb.mxu1 %v710_v36  ;;  %v803_v36 = vld [vmem:[#allocation13 + $0x20] sm:$0xff] }
  0x84   : > { %742 = vmatpush.msrb.mxu0 %v707_v37  ;;  %v819_v37 = vld [vmem:[#allocation13 + $0xa0] sm:$0xff] }
  0x85   : > { %556 = vmatmul.f32.gmra.mxu0 %v492_v60  ;;  %771 = vmatpush.msrb.mxu1 %v708_v38 }
  0x86   : > { %585 = vmatmul.f32.gmra.mxu1 %v492_v60  ;;  %743 = vmatpush.msrb.mxu0 %v705_v39  ;;  %v698_v60 = vld [vmem:[#allocation11 + $0x18] sm:$0xff] }
  0x87   : > { %772 = vmatpush.msrb.mxu1 %v706_v40  ;;  %v802_v39 = vld [vmem:[#allocation13 + $0x18] sm:$0xff] }
  0x88   : > { %744 = vmatpush.msrb.mxu0 %v703_v45  ;;  %v818_v40 = vld [vmem:[#allocation13 + $0x98] sm:$0xff] }
  0x89   : > { %773 = vmatpush.msrb.mxu1 %v704_v46 }
  0x8a   : > { %745 = vmatpush.msrb.mxu0 %v701_v49  ;;  %v816_v49 = vld [vmem:[#allocation13 + $0x88] sm:$0xff] }
  0x8b   : > { %774 = vmatpush.msrb.mxu1 %v702_v56 }
  0x8c   : > { %746 = vmatpush.msrb.mxu0 %v699_v57 }
  0x8d   : > { %775 = vmatpush.msrb.mxu1 %v700_v58 }
  0x8e   : > { %747 = vmatpush.msrb.mxu0 %v697_v59 }
  0x8f   : > { %776 = vmatpush.msrb.mxu1 %v698_v60 }
  0x90   : > { %748 = vmatpush.msrb.mxu0 %v695_v61 }
  0x91   : > { %777 = vmatpush.msrb.mxu1 %v696_v62 }
  0xea   : > { %v548_v13 = vpop.f32.mrf.mxu0 }
  0xeb   : > { %v577_v14 = vpop.f32.mrf.mxu1  ;;  %v549_v15 = vadd.f32 %v548_v13, %v1810_v5  ;;  %v810_v13 = vld [vmem:[#allocation13 + $0x58] sm:$0xff] }
  0xec   : > { %v578_v16 = vadd.f32 %v577_v14, %v1812_v6  ;;  %v826_v14 = vld [vmem:[#allocation13 + $0xd8] sm:$0xff]  ;;  %839 = vmatpush.msrb.mxu2 %v810_v13 }
  0xed   : > { %v589_v19 = vmax.f32 %v549_v15, 0.0  ;;  %v809_v15 = vld [vmem:[#allocation13 + $0x50] sm:$0xff] }
  0xee   : > { %v590_v20 = vmax.f32 %v578_v16, 0.0  ;;  %v825_v16 = vld [vmem:[#allocation13 + $0xd0] sm:$0xff]  ;;  %840 = vmatpush.msrb.mxu2 %v809_v15 }
  0xef   : > { %649 = vmatmul.f32.vlgmr.msra.gmra.mxu2 %v589_v19 }
  0xf0   : > { %678 = vmatmul.f32.vlgmr.msra.gmra.mxu3 %v590_v20  ;;  %v808_v20 = vld [vmem:[#allocation13 + $0x48] sm:$0xff] }
  0xf1   : > { %841 = vmatpush.msrb.mxu2 %v808_v20 }
  0xf2   : > { %v551_v27 = vpop.f32.mrf.mxu0 }
  0xf3   : > { %v580_v28 = vpop.f32.mrf.mxu1  ;;  %v552_v29 = vadd.f32 %v551_v27, %v1810_v5  ;;  %v822_v27 = vld [vmem:[#allocation13 + $0xb8] sm:$0xff]  ;;  %842 = vmatpush.msrb.mxu2 %v807_v23 }
  0xf4   : > { %v581_v30 = vadd.f32 %v580_v28, %v1812_v6  ;;  %v805_v28 = vld [vmem:[#allocation13 + $0x30] sm:$0xff] }
  0xf5   : > { %v591_v33 = vmax.f32 %v552_v29, 0.0  ;;  %v821_v29 = vld [vmem:[#allocation13 + $0xb0] sm:$0xff]  ;;  %843 = vmatpush.msrb.mxu2 %v806_v26 }
  0xf6   : > { %v592_v34 = vmax.f32 %v581_v30, 0.0 }
  0xf7   : > { %652 = vmatmul.f32.gmra.mxu2 %v591_v33  ;;  %v804_v33 = vld [vmem:[#allocation13 + $0x28] sm:$0xff] }
  0xf8   : > { %681 = vmatmul.f32.gmra.mxu3 %v592_v34  ;;  %v820_v34 = vld [vmem:[#allocation13 + $0xa8] sm:$0xff]  ;;  %844 = vmatpush.msrb.mxu2 %v805_v28 }
  0xfa   : > { %v554_v41 = vpop.f32.mrf.mxu0  ;;  %845 = vmatpush.msrb.mxu2 %v804_v33 }
  0xfb   : > { %v583_v42 = vpop.f32.mrf.mxu1  ;;  %v555_v43 = vadd.f32 %v554_v41, %v1810_v5  ;;  %v801_v41 = vld [vmem:[#allocation13 + $0x10] sm:$0xff] }
  0xfc   : > { %v584_v44 = vadd.f32 %v583_v42, %v1812_v6  ;;  %846 = vmatpush.msrb.mxu2 %v803_v36 }
  0xfd   : > { %v593_v47 = vmax.f32 %v555_v43, 0.0 }
  0xfe   : > { %v594_v48 = vmax.f32 %v584_v44, 0.0  ;;  %847 = vmatpush.msrb.mxu2 %v802_v39 }
  0xff   : > { %655 = vmatmul.f32.gmra.mxu2 %v593_v47  ;;  %v817_v47 = vld [vmem:[#allocation13 + $0x90] sm:$0xff] }
 0x100   : > { %684 = vmatmul.f32.gmra.mxu3 %v594_v48  ;;  %848 = vmatpush.msrb.mxu2 %v801_v41  ;;  %v800_v48 = vld [vmem:[#allocation13 + $0x8] sm:$0xff] }
 0x102   : > { %v557_v50 = vpop.f32.mrf.mxu0  ;;  %849 = vmatpush.msrb.mxu2 %v800_v48 }
 0x103   : > { %v586_v51 = vpop.f32.mrf.mxu1  ;;  %v558_v52 = vadd.f32 %v557_v50, %v1810_v5  ;;  %v829_v5 = vld [vmem:[#allocation13 + $0xf0] sm:$0xff]  ;;  %v799_v50 = vld [vmem:[#allocation13] sm:$0xff] }
 0x104   : > { %v587_v53 = vadd.f32 %v586_v51, %v1812_v6  ;;  %865 = vmatpush.msrb.mxu3 %v829_v5  ;;  %v815_v51 = vld [vmem:[#allocation13 + $0x80] sm:$0xff]  ;;  %850 = vmatpush.msrb.mxu2 %v799_v50 }
 0x105   : > { %v595_v54 = vmax.f32 %v558_v52, 0.0  ;;  %v727_v52 = vld [vmem:[%s1906_s6] sm:$0x3] }
 0x106   : > { %v596_v55 = vmax.f32 %v587_v53, 0.0  ;;  %866 = vmatpush.msrb.mxu3 %v828_v8  ;;  %v729_v53 = vperm.slane %v727_v52, 0 }
 0x107   : > { %658 = vmatmul.f32.gmra.mxu2 %v595_v54  ;;  %v730_v54 = vperm.slane %v727_v52, 1 }
 0x108   : > { %687 = vmatmul.f32.gmra.mxu3 %v596_v55 }
 0x109   : > { %867 = vmatpush.msrb.mxu3 %v827_v11 }
 0x10b   : > { %868 = vmatpush.msrb.mxu3 %v826_v14 }
 0x10d   : > { %869 = vmatpush.msrb.mxu3 %v825_v16 }
 0x10f   : > { %870 = vmatpush.msrb.mxu3 %v824_v21 }
 0x111   : > { %871 = vmatpush.msrb.mxu3 %v823_v24 }
 0x113   : > { %872 = vmatpush.msrb.mxu3 %v822_v27 }
 0x115   : > { %873 = vmatpush.msrb.mxu3 %v821_v29 }
 0x117   : > { %874 = vmatpush.msrb.mxu3 %v820_v34 }
 0x119   : > { %875 = vmatpush.msrb.mxu3 %v819_v37 }
 0x11b   : > { %876 = vmatpush.msrb.mxu3 %v818_v40 }
 0x11d   : > { %877 = vmatpush.msrb.mxu3 %v817_v47 }
 0x11f   : > { %878 = vmatpush.msrb.mxu3 %v816_v49 }
 0x121   : > { %879 = vmatpush.msrb.mxu3 %v815_v51 }
 0x172   : > { %v650_v3 = vpop.f32.mrf.mxu2 }
 0x173   : > { %v679_v4 = vpop.f32.mrf.mxu3  ;;  %v651_v6 = vadd.f32 %v1822_v63, %v650_v3 }
 0x175   : > { %v680_v9 = vadd.f32 %v679_v4, %v651_v6 }
 0x177   : > { %v691_v12 = vmax.f32 %v680_v9, 0.0 }
 0x179   : > { %893 = vst [vmem:[%s1826_s2] sm:$0xff] %v691_v12  ;;  %749 = vmatmul.f32.vlgmr.msrb.gmra.mxu0 %v691_v12  ;;  %778 = vmatmul.f32.vlgmr.msrb.gmra.mxu1 %v691_v12 }
 0x17a   : > { %v653_v17 = vpop.f32.mrf.mxu2 }
 0x17b   : > { %v682_v18 = vpop.f32.mrf.mxu3  ;;  %v654_v19 = vadd.f32 %v1822_v63, %v653_v17 }
 0x17d   : > { %v683_v22 = vadd.f32 %v682_v18, %v654_v19 }
 0x17f   : > { %v692_v25 = vmax.f32 %v683_v22, 0.0 }
 0x181   : > { %894 = vst [vmem:[%s1826_s2 + $0x8] sm:$0xff] %v692_v25  ;;  %752 = vmatmul.f32.gmra.mxu0 %v692_v25  ;;  %781 = vmatmul.f32.gmra.mxu1 %v692_v25 }
 0x182   : > { %v656_v30 = vpop.f32.mrf.mxu2 }
 0x183   : > { %v685_v31 = vpop.f32.mrf.mxu3  ;;  %v657_v32 = vadd.f32 %v1822_v63, %v656_v30 }
 0x185   : > { %v686_v35 = vadd.f32 %v685_v31, %v657_v32 }
 0x187   : > { %v693_v38 = vmax.f32 %v686_v35, 0.0 }
 0x189   : > { %895 = vst [vmem:[%s1826_s2 + $0x10] sm:$0xff] %v693_v38  ;;  %755 = vmatmul.f32.gmra.mxu0 %v693_v38  ;;  %784 = vmatmul.f32.gmra.mxu1 %v693_v38 }
 0x18a   : > { %v659_v42 = vpop.f32.mrf.mxu2 }
 0x18b   : > { %v688_v43 = vpop.f32.mrf.mxu3  ;;  %v660_v44 = vadd.f32 %v1822_v63, %v659_v42 }
 0x18d   : > { %v689_v45 = vadd.f32 %v688_v43, %v660_v44 }
 0x18f   : > { %v694_v46 = vmax.f32 %v689_v45, 0.0 }
 0x191   : > { %896 = vst [vmem:[%s1826_s2 + $0x18] sm:$0xff] %v694_v46  ;;  %758 = vmatmul.f32.gmra.mxu0 %v694_v46  ;;  %787 = vmatmul.f32.gmra.mxu1 %v694_v46 }
 0x1f6   : > { %v750_v55 = vpop.f32.mrf.mxu0  ;;  %v779_v56 = vpop.f32.mrf.mxu1 }
 0x1f7   : > { %v751_v57 = vadd.f32 %v750_v55, %v729_v53  ;;  %v780_v58 = vadd.f32 %v779_v56, %v730_v54 }
 0x1f9   : > { %v791_v59 = vmax.f32 %v751_v57, 0.0  ;;  %v792_v60 = vmax.f32 %v780_v58, 0.0 }
 0x1fb   : > { %851 = vmatmul.f32.vlgmr.msrb.gmra.mxu2 %v791_v59  ;;  %880 = vmatmul.f32.vlgmr.msrb.gmra.mxu3 %v792_v60 }
 0x1fe   : > { %v753_v61 = vpop.f32.mrf.mxu0  ;;  %v782_v62 = vpop.f32.mrf.mxu1 }
 0x1ff   : > { %v754_v63 = vadd.f32 %v753_v61, %v729_v53  ;;  %v783_v0 = vadd.f32 %v782_v62, %v730_v54 }
 0x201   : > { %v793_v1 = vmax.f32 %v754_v63, 0.0  ;;  %v794_v2 = vmax.f32 %v783_v0, 0.0 }
 0x203   : > { %854 = vmatmul.f32.gmra.mxu2 %v793_v1  ;;  %883 = vmatmul.f32.gmra.mxu3 %v794_v2 }
 0x206   : > { %v756_v3 = vpop.f32.mrf.mxu0  ;;  %v785_v4 = vpop.f32.mrf.mxu1 }
 0x207   : > { %v757_v5 = vadd.f32 %v756_v3, %v729_v53  ;;  %v786_v6 = vadd.f32 %v785_v4, %v730_v54 }
 0x209   : > { %v795_v7 = vmax.f32 %v757_v5, 0.0  ;;  %v796_v8 = vmax.f32 %v786_v6, 0.0 }
 0x20b   : > { %857 = vmatmul.f32.gmra.mxu2 %v795_v7  ;;  %886 = vmatmul.f32.gmra.mxu3 %v796_v8 }
 0x20e   : > { %v759_v9 = vpop.f32.mrf.mxu0  ;;  %v788_v10 = vpop.f32.mrf.mxu1 }
 0x20f   : > { %v760_v11 = vadd.f32 %v759_v9, %v729_v53  ;;  %v789_v12 = vadd.f32 %v788_v10, %v730_v54 }
 0x211   : > { %v797_v13 = vmax.f32 %v760_v11, 0.0  ;;  %v798_v14 = vmax.f32 %v789_v12, 0.0 }
 0x213   : > { %860 = vmatmul.f32.gmra.mxu2 %v797_v13  ;;  %889 = vmatmul.f32.gmra.mxu3 %v798_v14 }
 0x214   : > { %1492 = shalt.err (!%p1489_p9)
}
 0x215   : > { %s1587_s21 = smov 128   ;;  %s1588_s18 = smov 8   ;;  %v1254_v15 = vld [vmem:[%s1908_s8] ss:$0 sm:$0xff] }
 0x216   : > { %1162 = dma.vmem_to_hbm [thread:$0]  (%p1747_p4), %s937_s17, 512, %s939_s3, %s907_s12, %s1587_s21, %s1587_s21, %s1588_s18  }
 0x217   : > { %s478_s24 = scalar_lea.vmem [#allocation14], %s1784_s5  ;;  %s918_s12 = scalar_lea.hbm %s1909_s9, %s1133_s25 }
 0x218   : > { %s919_s27 = sshll.u32 %s478_s24, 4  ;;  %s921_s5 = sshll.u32 %s918_s12, 4  ;;  %s920_s27 = int_to_ptr.vmem [resolvable:$true] %s919_s27  ;;  %s922_s5 = int_to_ptr.hbm [resolvable:$true] %s921_s5 }
 0x219   : > { %s902_s1 = scalar_lea.sflag [#allocation4], %s1781_s23  ;;  %s1507_s7 = sshra.s32 %s922_s5, 4  ;;  %s1508_s7 = int_to_ptr.hbm [resolvable:$true] %s1507_s7 }
 0x21a   : > { %s1509_s26 = scalar_lea.hbm %s1508_s7, 32  ;;  %s1513_s25 = scalar_lea.hbm %s1909_s9, 64 }
 0x21b   : > { %p1510_p10 = scmp.ne.s32.totalorder %s1508_s7, %s1509_s26  ;;  %p1514_p0 = scmp.lt.s32.totalorder %s1508_s7, %s1909_s9 }
 0x21c   : > { %p1515_p2 = scmp.lt.s32.totalorder %s1513_s25, %s1509_s26 }
 0x21d   : > { %p1511_p13 = pnand %p1510_p10, %p1747_p4 }
 0x21e   : > { %p1516_p1 = por %p1515_p2, %p1514_p0 }
 0x21f   : > { %p1512_p11 = pneg %p1511_p13 }
 0x221   : > { %p1517_p3 = pnand %p1516_p1, %p1512_p11 }
 0x27e   : > { %v852_v16 = vpop.f32.mrf.mxu2  ;;  %v881_v17 = vpop.f32.mrf.mxu3 }
 0x27f   : > { %v853_v18 = vadd.f32 %v1254_v15, %v852_v16 }
 0x281   : > { %v882_v19 = vadd.f32 %v881_v17, %v853_v18 }
 0x283   : > { %897 = vst [vmem:[%s478_s24] sm:$0xff] %v882_v19 }
 0x286   : > { %v855_v20 = vpop.f32.mrf.mxu2  ;;  %v884_v21 = vpop.f32.mrf.mxu3 }
 0x287   : > { %v856_v22 = vadd.f32 %v1254_v15, %v855_v20 }
 0x289   : > { %v885_v23 = vadd.f32 %v884_v21, %v856_v22 }
 0x28b   : > { %898 = vst [vmem:[%s478_s24 + $0x8] sm:$0xff] %v885_v23 }
 0x28e   : > { %v858_v24 = vpop.f32.mrf.mxu2  ;;  %v887_v25 = vpop.f32.mrf.mxu3 }
 0x28f   : > { %v859_v26 = vadd.f32 %v1254_v15, %v858_v24 }
 0x291   : > { %v888_v27 = vadd.f32 %v887_v25, %v859_v26 }
 0x293   : > { %899 = vst [vmem:[%s478_s24 + $0x10] sm:$0xff] %v888_v27 }
 0x296   : > { %v861_v28 = vpop.f32.mrf.mxu2  ;;  %v890_v30 = vpop.f32.mrf.mxu3 }
 0x297   : > { %v862_v29 = vadd.f32 %v1254_v15, %v861_v28 }
 0x299   : > { %v891_v31 = vadd.f32 %v890_v30, %v862_v29 }
 0x29b   : > { %900 = vst [vmem:[%s478_s24 + $0x18] sm:$0xff] %v891_v31 }
 0x29c   : > { %1520 = shalt.err (!%p1517_p3)
}
 0x29d   : > { %1161 = dma.vmem_to_hbm [thread:$0]  (%p1747_p4), %s920_s27, 512, %s922_s5, %s902_s1, %s1587_s21, %s1587_s21, %s1588_s18  }
 0x29e PF: > { %s953_s23 = sand.u32 1, %s1563_s13   ;;  %p1935_p5 = scmp.ge.s32.totalorder %s1575_s16, 2 }
 0x29f   : > { %s954_s11 = scalar_lea.sflag [#allocation4], %s953_s23 }
 0x2a0   : > { %p1189_p12 = pnand %p1935_p5, %p1751_p6 }
 0x2a2   : > { %p1190_p7 = pneg %p1189_p12 }
 0x2a4   : > { %1554 = dma.done.wait (%p1190_p7), %s954_s11, 512  }
 0x2a5   : > { %1556 = vsyncadd (%p1190_p7), %s954_s11, 4294966784  ;;  %s964_s24 = scalar_lea.sflag [#allocation16], %s953_s23 }
 0x2a6   : > { %1558 = dma.done.wait (%p1190_p7), %s964_s24, 512  }
 0x2a7   : > { %1560 = vsyncadd (%p1190_p7), %s964_s24, 4294966784  ;;  %p30_p4 = scmp.ge.s32.totalorder %s1721_s19, 4   ;;  %s1936_s13 = smov %s1567_s14 }
 0x2a8   : > { %s1937_s14 = smov %s1571_s15  ;;  %s1938_s15 = smov %s1732_s29 }
 0x2a9   : > { %s1939_s16 = smov %s1721_s19  ;;  %32 = sbr.rel (!%p30_p4) target bundleno = 17 (0x11), region = 142 }
 0x2ae   :  { %970 = vsyncpa [#allocation3], 1 }
 0x2af   :  { %972 = vsyncpa [#allocation3 + $0x1], 1 }
 0x2b0   :  { %973 = vsyncpa [#allocation6], 1 }
 0x2b1   :  { %974 = vsyncpa [#allocation9], 1 }
 0x2b2   :  { %975 = vsyncpa [#allocation12], 1 }
 0x2b3   :  { %976 = vsyncpa [#allocation4], 1 }
 0x2b4   :  { %978 = vsyncpa [#allocation4 + $0x1], 1 }
 0x2b5   :  { %979 = vsyncpa [#allocation16], 1 }
 0x2b6   :  { %981 = vsyncpa [#allocation16 + $0x1], 1 }

</bundles_post_ra>
